<compile_context>
chip_gen: v5e
topology: v5e:2x2
jax: 0.10.0
libtpu: 0.0.40
codegen_flags: <defaults>
</compile_context>

<pallas_src>
import jax
import jax.numpy as jnp
from jax.experimental import pallas as pl
from jax.experimental.pallas import tpu as pltpu


def _round_up(n, m):
    return ((n + m - 1) // m) * m


def _vmem_capacity_bytes():
    """Per-generation VMEM capacity; conservative v7x fallback (64 MiB/TC)."""
    try:
        return int(pltpu.get_tpu_info().vmem_capacity_bytes)
    except Exception:
        return 64 * 1024 * 1024


def _choose_tile_b(B, D, vmem_budget_bytes, max_tile_rows):
    """Batch tile sized by bytes, not rows.

    VMEM bytes per batch row:
      * f32 x block, double-buffered ............ 2 * 4 * D
      * lane-dense f32 out block, 2 buffers ..... 2 * 4   (vs 1024 B/row for (tb,1))
      * in-kernel temporaries (bf16 x copy, h1 f32+bf16, h2 f32,
        tile-padded out column) ................. ~2*D + 736
    """
    x_io = 2 * 4 * D
    out_io = 2 * 4
    interm = 2 * D + 4 * 32 + 2 * 32 + 4 * 16 + 4 * 128
    per_row = x_io + out_io + interm

    cap_vmem = max(8, vmem_budget_bytes // per_row)
    # ~4 MiB of x per pipeline buffer amortizes the ~0.35 us per-grid-step cost.
    cap_stream = max(256, (4 * 1024 * 1024) // (4 * D))
    tb = max(8, min(cap_vmem, cap_stream, max_tile_rows, _round_up(B, 8)))
    if tb >= 128:
        tb = (tb // 128) * 128   # lane-friendly rounding for large tiles
    else:
        tb = _round_up(tb, 8)    # f32 sublane rounding for tiny batches
    return tb


def mlp_kernel(x_ref, w1_ref, b1_ref, w2_ref, b2_ref, w3_ref, b3_ref, o_ref):
    """One batch tile of the 3-layer MLP.

    x_ref : [tile_b, D]   f32   (pipelined HBM stream; cast to bf16 in-kernel)
    w1_ref: [D, 32]       bf16
    b1_ref: [1, 32]       f32
    w2_ref: [32, 16]      bf16
    b2_ref: [1, 16]       f32
    w3_ref: [1, 16]       f32   (row for the VPU reduce)
    b3_ref: [1, 1]        f32
    o_ref : [1, 1, tile_b] f32  (lane-dense: batch on the lane axis)
    """
    # Layer 1: cast x to bf16 on the VPU (halves MXU feed vs f32), f32 accumulate.
    xb = x_ref[...].astype(jnp.bfloat16)
    h1 = jnp.dot(xb, w1_ref[...], preferred_element_type=jnp.float32)
    h1 = jnp.maximum(h1 + b1_ref[...], 0.0)                       # [tile_b, 32] f32

    # Layer 2: bf16 x bf16 MXU matmul, f32 accumulation, bias/ReLU in f32.
    h2 = jnp.dot(h1.astype(jnp.bfloat16), w2_ref[...],
                 preferred_element_type=jnp.float32)
    h2 = jnp.maximum(h2 + b2_ref[...], 0.0)                       # [tile_b, 16] f32

    # Layer 3: output width 1 -> VPU multiply + lane reduction (MXU stays idle).
    out_col = jnp.sum(h2 * w3_ref[...], axis=-1, keepdims=True) + b3_ref[...]

    # Lane-dense store: [tile_b, 1] -> [1, 1, tile_b] (sublane->lane relayout on
    # the otherwise-idle XLU) so the writeback is unmasked full-lane stores.
    o_ref[...] = out_col.reshape(o_ref.shape).astype(o_ref.dtype)


def deep_nn_forward(x, params, *, max_tile_rows=4096):
    """x: [B, D] float. params in PyTorch nn.Linear layout:
       w1 [32, D], b1 [32], w2 [16, 32], b2 [16], w3 [1, 16], b3 [1]."""
    B, D = x.shape
    if x.dtype != jnp.float32:
        x = x.astype(jnp.float32)

    cap = _vmem_capacity_bytes()
    vmem_limit = int(cap * 0.75)          # ~48 MiB on v7x, ~96 MiB on v5e/v6e
    budget = int(cap * 0.60)              # tiling budget, headroom for Mosaic scratch
    tb = _choose_tile_b(B, D, budget, max_tile_rows)
    n_tiles = -(-B // tb)                 # ragged last block handled by Pallas

    # Tiny parameters: converted once, kept VMEM-resident across the whole grid.
    w1 = jnp.transpose(params["w1"]).astype(jnp.bfloat16)         # [D, 32]
    b1 = params["b1"].astype(jnp.float32).reshape(1, 32)
    w2 = jnp.transpose(params["w2"]).astype(jnp.bfloat16)         # [32, 16]
    b2 = params["b2"].astype(jnp.float32).reshape(1, 16)
    w3 = params["w3"].astype(jnp.float32).reshape(1, 16)
    b3 = params["b3"].astype(jnp.float32).reshape(1, 1)

    out = pl.pallas_call(
        mlp_kernel,
        # Lane-dense output slab: one tb-wide row per grid step.
        out_shape=jax.ShapeDtypeStruct((n_tiles, 1, tb), jnp.float32),
        grid_spec=pl.GridSpec(
            grid=(n_tiles,),
            in_specs=[
                # x: the only large input; pipelined/double-buffered f32 stream.
                pl.BlockSpec((tb, D), lambda i: (i, 0)),
                # Weights/biases: constant index_map -> stay resident in VMEM.
                pl.BlockSpec(w1.shape, lambda i: (0, 0)),
                pl.BlockSpec(b1.shape, lambda i: (0, 0)),
                pl.BlockSpec(w2.shape, lambda i: (0, 0)),
                pl.BlockSpec(b2.shape, lambda i: (0, 0)),
                pl.BlockSpec(w3.shape, lambda i: (0, 0)),
                pl.BlockSpec(b3.shape, lambda i: (0, 0)),
            ],
            out_specs=pl.BlockSpec((1, 1, tb), lambda i: (i, 0, 0)),
        ),
        compiler_params=pltpu.CompilerParams(
            # Batch tiles are independent -> shardable across v7x's 2 TCs.
            # (If one TC already saturates HBM this is simply neutral.)
            dimension_semantics=("parallel",),
            vmem_limit_bytes=vmem_limit,
        ),
    )(x, w1, b1, w2, b2, w3, b3)

    # Un-flatten the lane-dense slab; tail rows of a ragged last tile are garbage
    # (never reduced over) and are sliced off here.
    return out.reshape(n_tiles * tb)[:B].reshape(B, 1)


def init_params(key, input_dim):
    """Deterministic init mirroring torch.nn.Linear (PyTorch [out, in] layout)."""
    ks = jax.random.split(key, 6)

    def uniform(k, shape, fan_in):
        bound = 1.0 / (fan_in ** 0.5)
        return jax.random.uniform(k, shape, jnp.float32, -bound, bound)

    return {
        "w1": uniform(ks[0], (32, input_dim), input_dim),
        "b1": uniform(ks[1], (32,), input_dim),
        "w2": uniform(ks[2], (16, 32), 32),
        "b2": uniform(ks[3], (16,), 32),
        "w3": uniform(ks[4], (1, 16), 16),
        "b3": uniform(ks[5], (1,), 16),
    }


def reference_forward(x, params):
    """Pure-JAX reference matching the kernel's numerics (x, w1, h1, w2 rounded
    to bf16; all accumulation in f32)."""
    xb = x.astype(jnp.bfloat16).astype(jnp.float32)
    w1 = params["w1"].astype(jnp.bfloat16).astype(jnp.float32)
    w2 = params["w2"].astype(jnp.bfloat16).astype(jnp.float32)
    h1 = jnp.maximum(xb @ w1.T + params["b1"], 0.0)
    h1 = h1.astype(jnp.bfloat16).astype(jnp.float32)
    h2 = jnp.maximum(h1 @ w2.T + params["b2"], 0.0)
    return h2 @ params["w3"].T + params["b3"]


if __name__ == "__main__":
    key = jax.random.PRNGKey(0)
    k_x, k_p, k_x2 = jax.random.split(key, 3)

    batch, input_dim = 8, 16
    x = jax.random.normal(k_x, (batch, input_dim), jnp.float32)
    params = init_params(k_p, input_dim)

    out = jax.block_until_ready(jax.jit(deep_nn_forward)(x, params))
    ref = reference_forward(x, params)
    assert out.shape == (batch, 1)
    # Tolerance covers bf16 inputs/activations + MXU-pass differences vs XLA.
    assert jnp.allclose(out, ref, atol=1e-2, rtol=1e-2), "mismatch vs reference"

    # Small multi-tile check: exercises >1 grid step, a ragged (partial) last x
    # block, and the lane-dense output path, still at tiny shapes.
    batch2 = 40
    x2 = jax.random.normal(k_x2, (batch2, input_dim), jnp.float32)
    out2 = jax.block_until_ready(deep_nn_forward(x2, params, max_tile_rows=16))
    ref2 = reference_forward(x2, params)
    assert out2.shape == (batch2, 1)
    assert jnp.allclose(out2, ref2, atol=1e-2, rtol=1e-2), "mismatch (multi-tile)"

    print("KERNEL_OK")
</pallas_src>

<mosaic_0001>
module attributes {stable_mosaic.version = 11 : i64} {
  func.func @mlp_kernel(%arg0: i32, %arg1: memref<8x16xf32, #tpu.memory_space<vmem>>, %arg2: memref<16x32xbf16, #tpu.memory_space<vmem>>, %arg3: memref<1x32xf32, #tpu.memory_space<vmem>>, %arg4: memref<32x16xbf16, #tpu.memory_space<vmem>>, %arg5: memref<1x16xf32, #tpu.memory_space<vmem>>, %arg6: memref<1x16xf32, #tpu.memory_space<vmem>>, %arg7: memref<1x1xf32, #tpu.memory_space<vmem>>, %arg8: memref<1x1x8xf32, #tpu.memory_space<vmem>>) attributes {dimension_semantics = [#tpu.dimension_semantics<parallel>], iteration_bounds = array<i64: 1>, scalar_prefetch = 0 : i64, scratch_operands = 0 : i64, tpu.core_type = #tpu.core_type<tc>, window_params = [{transform_indices = @transform_0, window_bounds = array<i64: 8, 16>}, {pipeline_mode = #tpu.pipeline_mode<synchronous>, transform_indices = @transform_1, window_bounds = array<i64: 16, 32>}, {pipeline_mode = #tpu.pipeline_mode<synchronous>, transform_indices = @transform_2, window_bounds = array<i64: 1, 32>}, {pipeline_mode = #tpu.pipeline_mode<synchronous>, transform_indices = @transform_3, window_bounds = array<i64: 32, 16>}, {pipeline_mode = #tpu.pipeline_mode<synchronous>, transform_indices = @transform_4, window_bounds = array<i64: 1, 16>}, {pipeline_mode = #tpu.pipeline_mode<synchronous>, transform_indices = @transform_5, window_bounds = array<i64: 1, 16>}, {pipeline_mode = #tpu.pipeline_mode<synchronous>, transform_indices = @transform_6, window_bounds = array<i64: 1, 1>}, {transform_indices = @transform_7, window_bounds = array<i64: 1, 1, 8>}]} {
    %c0 = arith.constant 0 : index
    %c0_0 = arith.constant 0 : index
    %0 = vector.load %arg1[%c0, %c0_0] : memref<8x16xf32, #tpu.memory_space<vmem>>, vector<8x16xf32>
    %1 = arith.truncf %0 : vector<8x16xf32> to vector<8x16xbf16>
    %c0_1 = arith.constant 0 : index
    %c0_2 = arith.constant 0 : index
    %2 = vector.load %arg2[%c0_1, %c0_2] : memref<16x32xbf16, #tpu.memory_space<vmem>>, vector<16x32xbf16>
    %cst = arith.constant dense<0.000000e+00> : vector<8x32xf32>
    %3 = tpu.matmul %1, %2, %cst {dimension_numbers = #tpu.dot_dimension_numbers<[1], [0], [0], [1], [0, 0, 1, 1], [], []>} : vector<8x16xbf16>, vector<16x32xbf16>, vector<8x32xf32> -> vector<8x32xf32>
    %c0_3 = arith.constant 0 : index
    %c0_4 = arith.constant 0 : index
    %4 = vector.load %arg3[%c0_3, %c0_4] : memref<1x32xf32, #tpu.memory_space<vmem>>, vector<1x32xf32>
    %5 = vector.broadcast %4 : vector<1x32xf32> to vector<8x32xf32>
    %6 = arith.addf %3, %5 : vector<8x32xf32>
    %cst_5 = arith.constant 0.000000e+00 : f32
    %7 = vector.broadcast %cst_5 : f32 to vector<8x32xf32>
    %8 = arith.maximumf %6, %7 : vector<8x32xf32>
    %9 = arith.truncf %8 : vector<8x32xf32> to vector<8x32xbf16>
    %c0_6 = arith.constant 0 : index
    %c0_7 = arith.constant 0 : index
    %10 = vector.load %arg4[%c0_6, %c0_7] : memref<32x16xbf16, #tpu.memory_space<vmem>>, vector<32x16xbf16>
    %cst_8 = arith.constant dense<0.000000e+00> : vector<8x16xf32>
    %11 = tpu.matmul %9, %10, %cst_8 {dimension_numbers = #tpu.dot_dimension_numbers<[1], [0], [0], [1], [0, 0, 1, 1], [], []>} : vector<8x32xbf16>, vector<32x16xbf16>, vector<8x16xf32> -> vector<8x16xf32>
    %c0_9 = arith.constant 0 : index
    %c0_10 = arith.constant 0 : index
    %12 = vector.load %arg5[%c0_9, %c0_10] : memref<1x16xf32, #tpu.memory_space<vmem>>, vector<1x16xf32>
    %13 = vector.broadcast %12 : vector<1x16xf32> to vector<8x16xf32>
    %14 = arith.addf %11, %13 : vector<8x16xf32>
    %cst_11 = arith.constant 0.000000e+00 : f32
    %15 = vector.broadcast %cst_11 : f32 to vector<8x16xf32>
    %16 = arith.maximumf %14, %15 : vector<8x16xf32>
    %c0_12 = arith.constant 0 : index
    %c0_13 = arith.constant 0 : index
    %17 = vector.load %arg6[%c0_12, %c0_13] : memref<1x16xf32, #tpu.memory_space<vmem>>, vector<1x16xf32>
    %18 = vector.broadcast %17 : vector<1x16xf32> to vector<8x16xf32>
    %19 = arith.mulf %16, %18 : vector<8x16xf32>
    %cst_14 = arith.constant dense<0.000000e+00> : vector<8xf32>
    %20 = vector.multi_reduction <add>, %19, %cst_14 [1] : vector<8x16xf32> to vector<8xf32>
    %21 = vector.shape_cast %20 : vector<8xf32> to vector<8x1xf32>
    %c0_15 = arith.constant 0 : index
    %c0_16 = arith.constant 0 : index
    %22 = vector.load %arg7[%c0_15, %c0_16] : memref<1x1xf32, #tpu.memory_space<vmem>>, vector<1x1xf32>
    %23 = vector.broadcast %22 : vector<1x1xf32> to vector<8x1xf32>
    %24 = arith.addf %21, %23 : vector<8x1xf32>
    %25 = vector.shape_cast %24 : vector<8x1xf32> to vector<1x1x8xf32>
    %c0_17 = arith.constant 0 : index
    %c0_18 = arith.constant 0 : index
    %c0_19 = arith.constant 0 : index
    %26 = vector.load %arg8[%c0_17, %c0_18, %c0_19] : memref<1x1x8xf32, #tpu.memory_space<vmem>>, vector<1x1x8xf32>
    tpu.vector_store %arg8[%c0_17, %c0_18, %c0_19], %25 {strides = array<i32>} : memref<1x1x8xf32, #tpu.memory_space<vmem>>, vector<1x1x8xf32>,
    return
  }
  func.func @transform_0(%arg0: i32) -> (i32, i32) {
    %c0_i32 = arith.constant 0 : i32
    %c0_i32_0 = arith.constant 0 : i32
    return %arg0, %c0_i32 : i32, i32
  }
  func.func @transform_1(%arg0: i32) -> (i32, i32) {
    %c0_i32 = arith.constant 0 : i32
    %c0_i32_0 = arith.constant 0 : i32
    %c0_i32_1 = arith.constant 0 : i32
    return %c0_i32, %c0_i32_0 : i32, i32
  }
  func.func @transform_2(%arg0: i32) -> (i32, i32) {
    %c0_i32 = arith.constant 0 : i32
    %c0_i32_0 = arith.constant 0 : i32
    %c0_i32_1 = arith.constant 0 : i32
    return %c0_i32, %c0_i32_0 : i32, i32
  }
  func.func @transform_3(%arg0: i32) -> (i32, i32) {
    %c0_i32 = arith.constant 0 : i32
    %c0_i32_0 = arith.constant 0 : i32
    %c0_i32_1 = arith.constant 0 : i32
    return %c0_i32, %c0_i32_0 : i32, i32
  }
  func.func @transform_4(%arg0: i32) -> (i32, i32) {
    %c0_i32 = arith.constant 0 : i32
    %c0_i32_0 = arith.constant 0 : i32
    %c0_i32_1 = arith.constant 0 : i32
    return %c0_i32, %c0_i32_0 : i32, i32
  }
  func.func @transform_5(%arg0: i32) -> (i32, i32) {
    %c0_i32 = arith.constant 0 : i32
    %c0_i32_0 = arith.constant 0 : i32
    %c0_i32_1 = arith.constant 0 : i32
    return %c0_i32, %c0_i32_0 : i32, i32
  }
  func.func @transform_6(%arg0: i32) -> (i32, i32) {
    %c0_i32 = arith.constant 0 : i32
    %c0_i32_0 = arith.constant 0 : i32
    %c0_i32_1 = arith.constant 0 : i32
    return %c0_i32, %c0_i32_0 : i32, i32
  }
  func.func @transform_7(%arg0: i32) -> (i32, i32, i32) {
    %c0_i32 = arith.constant 0 : i32
    %c0_i32_0 = arith.constant 0 : i32
    %c0_i32_1 = arith.constant 0 : i32
    return %arg0, %c0_i32, %c0_i32_0 : i32, i32, i32
  }
}

</mosaic_0001>

<bundles_post_ra>
// kernel: deep_nn_forward.1
= control target key start
LH: loop header
LB: loop body
LE: loop exit
PB: predicated region body
PF: predicated region fallthrough
CT: control target
= control target key end

     0   :  { %s261_s0 = inlined_call_operand.vmem [shape: f32[8,16], index: 0, kind: input, shape index: {}]   ;;  %s262_s1 = inlined_call_operand.vmem [shape: bf16[16,32], index: 1, kind: input, shape index: {}]   ;;  %s263_s2 = inlined_call_operand.vmem [shape: f32[1,32], index: 2, kind: input, shape index: {}]   ;;  %s264_s3 = inlined_call_operand.vmem [shape: bf16[32,16], index: 3, kind: input, shape index: {}]   ;;  %s265_s4 = inlined_call_operand.vmem [shape: f32[1,16], index: 4, kind: input, shape index: {}]   ;;  %s266_s5 = inlined_call_operand.vmem [shape: f32[1,16], index: 5, kind: input, shape index: {}]   ;;  %s267_s6 = inlined_call_operand.<no memory space> [shape: f32[1,1], index: 6, kind: input, shape index: {}]   ;;  %s268_s7 = inlined_call_operand.hbm [shape: f32[1,1,8], index: 7, kind: output, shape index: {}]  }
   0x1   :  { %v12_v0 = vstv %s267_s6 }
   0x2   :  { %13 = vst [vmem:[#allocation2] sm:$0x1] %v12_v0 }
   0x3   :  { %v154_v1 = vld [vmem:[%s262_s1] sm:$0xff]  ;;  %vm44_vm0 = vcmask 130048  }
   0x4   :  { %v30_v2 = vld [vmem:[%s261_s0] sm:$0xff]  ;;  %55 = vmatpush.bf16.msra.mxu0 %v154_v1 }
   0x5   :  { %v31_v3 = vpack.c.bf16 %v30_v2, %v30_v2 }
   0x6   :  { %14 = vsyncpa [#allocation4], 0  ;;  %v156_v4 = vld [vmem:[%s264_s3 + $0x8] sm:$0xff]  ;;  %v155_v5 = vld [vmem:[%s264_s3] sm:$0xff]  ;;  %vm83_vm1 = vcmask 261120   ;;  %v190_v20 = vmov 0   ;;  %v118_v24 = vlaneseq }
   0x7   :  { %144 = vmatmul.msk.bf16.vlgmr.msra.gmra.mxu0 %vm44_vm0, %v31_v3  ;;  %93 = vmatpush.bf16.msra.mxu1 %v156_v4  ;;  %v160_v6 = vld [vmem:[%s263_s2] ss:$0 sm:$0xff]  ;;  %s191_s2 = smov [#allocation3]   ;;  %vm122_vm2 = vcmask 57344  }
   0x8   :  { %v161_v12 = vld [vmem:[%s265_s4] ss:$0 sm:$0xff]  ;;  %159 = vset.pattern.permute.xlu0 %v190_v20  ;;  %v119_v25 = vand.u32 127, %v118_v24  ;;  %s129_s4 = sshll.u32 %s191_s2, 4  ;;  %s130_s4 = int_to_ptr.vmem [resolvable:$true] %s129_s4 }
   0x9   :  { %v162_v15 = vld [vmem:[%s266_s5] ss:$0 sm:$0xff]  ;;  %s131_s5 = sshll.u32 %s268_s7, 4  ;;  %s132_s5 = int_to_ptr.hbm [resolvable:$true] %s131_s5 }
   0xa   :  { %v163_v21 = vld [vmem:[#allocation2] ss:$0 sm:$0xff] }
   0xb   :  { %94 = vmatpush.bf16.msra.mxu1 %v155_v5 }
  0x84   :  { %v57_v7 = vpop.f32.mrf.mxu0 }
  0x85   :  { %v58_v8 = vadd.f32 %v160_v6, %v57_v7 }
  0x87   :  { %v61_v9 = vmax.f32 %v58_v8, 0.0 }
  0x89   :  { %v62_v10 = vpack.c.bf16 %v61_v9, %v61_v9 }
  0x8b   :  { %153 = vmatmul.msk.bf16.vlgmr.msra.gmra.mxu1 %vm83_vm1, %v62_v10 }
  0x8c   :  { %v59_v11 = vpop.f32.mrf.mxu0 }
 0x108   :  { %v96_v13 = vpop.f32.mrf.mxu1 }
 0x109   :  { %v97_v14 = vadd.f32 %v161_v12, %v96_v13 }
 0x10b   :  { %v100_v16 = vmax.f32 %v97_v14, 0.0 }
 0x10d   :  { %v105_v17 = vmul.f32 %v162_v15, %v100_v16 }
 0x10f   :  { %v106_v18 = vsel %vm44_vm0, %v105_v17, 0.0 }
 0x110   :  { %v98_v19 = vpop.f32.mrf.mxu1  ;;  %107 = vadd.xlane.f32.xlu0 %v106_v18 }
 0x183   :  { %v108_v22 = vpop.xlane.xlu0 %107 }
 0x184   :  { %v113_v23 = vadd.f32 %v163_v21, %v108_v22 }
 0x186   :  { %116 = vperm.xlu0 %159, %v113_v23  }
 0x1f8   :  { %v117_v26 = vpop.permute.xlu0 %116 }
 0x1f9   :  { %v120_v27 = vperm.slane %v117_v26, %v119_v25 }
 0x1fb   :  { %123 = vst.msk [vmem:[#allocation3] sm:$0x1] %vm122_vm2, %v120_v27 }
 0x1fc   :  { %134 = dma.vmem_to_hbm [thread:$0]  %s130_s4, 16, %s132_s5, [#allocation4]  }
 0x1fd   :  { %188 = dma.done.wait [#allocation4], 16  }
 0x1fe   :  { %189 = vsyncadd [#allocation4], 4294967280 }
 0x1ff   :  { %139 = vsyncpa [#allocation4], 1 }

</bundles_post_ra>
